<compile_context>
chip_gen: v7x
topology: tpu7x:2x2x1
jax: 0.10.0
libtpu: 0.0.40
codegen_flags: <defaults>
</compile_context>

<pallas_src>
import jax
import jax.numpy as jnp
from jax.experimental import pallas as pl
from jax.experimental.pallas import tpu as pltpu


# ----------------------------------------------------------------------------
# Noise schedule (make_beta_schedule 'linear' + set_new_noise_schedule subset)
# ----------------------------------------------------------------------------
def make_sqrt_alphas_cumprod_prev(n_timestep, linear_start=1e-4, linear_end=2e-2):
    betas = jnp.linspace(linear_start, linear_end, n_timestep, dtype=jnp.float32)
    alphas = 1.0 - betas
    alphas_cumprod = jnp.cumprod(alphas)
    return jnp.sqrt(jnp.concatenate([jnp.ones((1,), jnp.float32), alphas_cumprod]))


# ----------------------------------------------------------------------------
# Kernel 1: fused q_sample + condition dropout + channel concat
# ----------------------------------------------------------------------------
def _qsample_concat_kernel(gamma_ref, sigma_ref, keep_ref,
                           x_ref, n_ref, em_ref, o_ref):
    # gamma/sigma/keep: SMEM (B,) scalar-prefetch refs
    # x_ref, n_ref: (1, C, T)   em_ref: (1, C_em, T)   o_ref: (1, C_em + C, T)
    bi = pl.program_id(0)
    gamma = gamma_ref[bi]
    sigma = sigma_ref[bi]
    keep = keep_ref[bi]

    c_em = em_ref.shape[1]
    # classifier-free-guidance condition dropout
    o_ref[0, :c_em, :] = em_ref[0] * keep
    # q_sample
    o_ref[0, c_em:, :] = gamma * x_ref[0] + sigma * n_ref[0]


def _pick_hw_tile(hw, max_tile=8192):
    if hw <= max_tile:
        return hw
    t = max_tile - (max_tile % 128)
    while t >= 128:
        if hw % t == 0:
            return t
        t -= 128
    return hw


def qsample_concat(gamma, sigma, keep, x_flat, n_flat, em_flat):
    b, c, hw = x_flat.shape
    c_em = em_flat.shape[1]
    c_out = c_em + c
    t_hw = _pick_hw_tile(hw)
    n_s = hw // t_hw

    return pl.pallas_call(
        _qsample_concat_kernel,
        out_shape=jax.ShapeDtypeStruct((b, c_out, hw), x_flat.dtype),
        grid_spec=pltpu.PrefetchScalarGridSpec(
            num_scalar_prefetch=3,
            grid=(b, n_s),
            in_specs=[
                pl.BlockSpec((1, c, t_hw), lambda bi, si, *_: (bi, 0, si)),
                pl.BlockSpec((1, c, t_hw), lambda bi, si, *_: (bi, 0, si)),
                pl.BlockSpec((1, c_em, t_hw), lambda bi, si, *_: (bi, 0, si)),
            ],
            out_specs=pl.BlockSpec((1, c_out, t_hw), lambda bi, si, *_: (bi, 0, si)),
        ),
        compiler_params=pltpu.CompilerParams(
            dimension_semantics=("parallel", "parallel")),
    )(gamma, sigma, keep, x_flat, n_flat, em_flat)


# ----------------------------------------------------------------------------
# Kernel 2: L1 loss with reduction='sum'  ->  sum |a - b|
# ----------------------------------------------------------------------------
def _l1_sum_kernel(a_ref, b_ref, o_ref, acc_ref):
    # a_ref, b_ref: (1, C, T)   o_ref: (1, T)   acc_ref: VMEM (1, T) f32
    @pl.when(pl.program_id(1) == 0)
    def _():
        acc_ref[...] = jnp.zeros_like(acc_ref)

    diff = a_ref[0].astype(jnp.float32) - b_ref[0].astype(jnp.float32)  # (C, T)
    acc_ref[...] += jnp.sum(jnp.abs(diff), axis=0, keepdims=True)       # (1, T)

    @pl.when(pl.program_id(1) == pl.num_programs(1) - 1)
    def _():
        o_ref[...] = acc_ref[...]


def l1_sum_loss(a_flat, b_flat):
    b, c, hw = a_flat.shape
    t_hw = _pick_hw_tile(hw)
    n_s = hw // t_hw

    partial = pl.pallas_call(
        _l1_sum_kernel,
        out_shape=jax.ShapeDtypeStruct((1, hw), jnp.float32),
        grid_spec=pltpu.PrefetchScalarGridSpec(
            num_scalar_prefetch=0,
            grid=(n_s, b),  # reduction (batch) axis last
            in_specs=[
                pl.BlockSpec((1, c, t_hw), lambda si, bi: (bi, 0, si)),
                pl.BlockSpec((1, c, t_hw), lambda si, bi: (bi, 0, si)),
            ],
            out_specs=pl.BlockSpec((1, t_hw), lambda si, bi: (0, si)),
            scratch_shapes=[pltpu.VMEM((1, t_hw), jnp.float32)],
        ),
        compiler_params=pltpu.CompilerParams(
            dimension_semantics=("parallel", "arbitrary")),
    )(a_flat, b_flat)
    # tiny final reduce (hw elements) in the wrapper
    return jnp.sum(partial)


# ----------------------------------------------------------------------------
# GaussianDiffusion.forward (= p_losses) wrapper
# ----------------------------------------------------------------------------
def gaussian_diffusion_forward(x_in, gamma, sigma, noise, keep, denoise_fn):
    x_abu = x_in["Abu"]
    x_em = x_in["em"]
    b, c, h, w = x_abu.shape
    hw = h * w

    # NCHW kept; spatial dims folded into the (lane-dense) last axis — no transposes.
    x_flat = x_abu.reshape(b, c, hw)
    n_flat = noise.reshape(b, c, hw)
    em_flat = x_em.reshape(b, x_em.shape[1], hw)

    x_input_flat = qsample_concat(gamma, sigma, keep, x_flat, n_flat, em_flat)
    x_input = x_input_flat.reshape(b, -1, h, w)

    # TODO(synk): denoise_fn is an external UNet injected into GaussianDiffusion;
    # a deterministic pure-JAX 1x1-conv stand-in is used here.
    x_recon = denoise_fn(x_input, gamma.reshape(b, 1))

    loss = l1_sum_loss(n_flat, x_recon.reshape(b, c, hw))
    return loss, x_input


def reference_forward(x_in, gamma, sigma, noise, keep, denoise_fn):
    x_abu = x_in["Abu"]
    x_em = x_in["em"]
    b = x_abu.shape[0]
    x_noisy = gamma[:, None, None, None] * x_abu + sigma[:, None, None, None] * noise
    em_cond = x_em * keep[:, None, None, None]
    x_input = jnp.concatenate([em_cond, x_noisy], axis=1)
    x_recon = denoise_fn(x_input, gamma.reshape(b, 1))
    loss = jnp.sum(jnp.abs(noise - x_recon))
    return loss, x_input


def make_standin_denoise_fn(key, c_in, c_out):
    w = jax.random.normal(key, (c_out, c_in), jnp.float32) * 0.1

    def denoise_fn(x, noise_level):  # x: (B, c_in, H, W), noise_level: (B, 1)
        y = jnp.einsum("oi,bihw->bohw", w, x)
        return y * (1.0 + noise_level[:, :, None, None])

    return denoise_fn


if __name__ == "__main__":
    key = jax.random.PRNGKey(0)
    k_param, k_x, k_em, k_t, k_gamma, k_noise, k_drop = jax.random.split(key, 7)

    # Small shapes consistent with the module: Abu = noisy channels, em = condition.
    B, C_ABU, C_EM, H, W = 2, 4, 6, 16, 16
    N_TIMESTEP = 100
    P_UNCOND = 0.1

    sqrt_acp_prev = make_sqrt_alphas_cumprod_prev(N_TIMESTEP)

    x_abu = jax.random.normal(k_x, (B, C_ABU, H, W), jnp.float32)
    x_em = jax.random.normal(k_em, (B, C_EM, H, W), jnp.float32)
    x_in = {"Abu": x_abu, "em": x_em}

    # Host-side randomness of p_losses, reproduced deterministically with jax.random.
    t = int(jax.random.randint(k_t, (), 1, N_TIMESTEP + 1))
    gamma = jax.random.uniform(
        k_gamma, (B,), jnp.float32,
        minval=sqrt_acp_prev[t - 1], maxval=sqrt_acp_prev[t])
    sigma = jnp.sqrt(jnp.maximum(1.0 - gamma * gamma, 0.0))
    noise = jax.random.normal(k_noise, x_abu.shape, jnp.float32)
    keep = (jax.random.uniform(k_drop, (B,)) >= P_UNCOND).astype(jnp.float32)

    denoise_fn = make_standin_denoise_fn(k_param, C_EM + C_ABU, C_ABU)

    loss, x_input = gaussian_diffusion_forward(x_in, gamma, sigma, noise, keep, denoise_fn)
    loss = jax.block_until_ready(loss)
    x_input = jax.block_until_ready(x_input)

    loss_ref, x_input_ref = reference_forward(x_in, gamma, sigma, noise, keep, denoise_fn)
    loss_ref = jax.block_until_ready(loss_ref)

    assert x_input.shape == (B, C_EM + C_ABU, H, W), x_input.shape
    assert jnp.allclose(x_input, x_input_ref, atol=1e-5, rtol=1e-5), \
        float(jnp.max(jnp.abs(x_input - x_input_ref)))
    assert jnp.allclose(loss, loss_ref, atol=5e-2, rtol=1e-4), \
        (float(loss), float(loss_ref))

    print("KERNEL_OK")
</pallas_src>

<mosaic_0001>
module attributes {stable_mosaic.version = 11 : i64} {
  func.func @_qsample_concat_kernel(%arg0: i32, %arg1: i32, %arg2: memref<2xf32, #tpu.memory_space<smem>>, %arg3: memref<2xf32, #tpu.memory_space<smem>>, %arg4: memref<2xf32, #tpu.memory_space<smem>>, %arg5: memref<1x4x256xf32, #tpu.memory_space<vmem>>, %arg6: memref<1x4x256xf32, #tpu.memory_space<vmem>>, %arg7: memref<1x6x256xf32, #tpu.memory_space<vmem>>, %arg8: memref<1x10x256xf32, #tpu.memory_space<vmem>>) attributes {dimension_semantics = [#tpu.dimension_semantics<parallel>, #tpu.dimension_semantics<parallel>], iteration_bounds = array<i64: 2, 1>, scalar_prefetch = 3 : i64, scratch_operands = 0 : i64, tpu.core_type = #tpu.core_type<tc>, window_params = [{transform_indices = @transform_0, window_bounds = array<i64: 1, 4, 256>}, {transform_indices = @transform_1, window_bounds = array<i64: 1, 4, 256>}, {transform_indices = @transform_2, window_bounds = array<i64: 1, 6, 256>}, {transform_indices = @transform_3, window_bounds = array<i64: 1, 10, 256>}]} {
    %0 = arith.index_cast %arg0 : i32 to index
    %1 = memref.load %arg2[%0] : memref<2xf32, #tpu.memory_space<smem>>
    %2 = arith.index_cast %arg0 : i32 to index
    %3 = memref.load %arg3[%2] : memref<2xf32, #tpu.memory_space<smem>>
    %4 = arith.index_cast %arg0 : i32 to index
    %5 = memref.load %arg4[%4] : memref<2xf32, #tpu.memory_space<smem>>
    %c0 = arith.constant 0 : index
    %c0_0 = arith.constant 0 : index
    %c0_1 = arith.constant 0 : index
    %6 = vector.load %arg7[%c0, %c0_0, %c0_1] : memref<1x6x256xf32, #tpu.memory_space<vmem>>, vector<1x6x256xf32>
    %7 = vector.shape_cast %6 : vector<1x6x256xf32> to vector<6x256xf32>
    %8 = vector.broadcast %5 : f32 to vector<6x256xf32>
    %9 = arith.mulf %7, %8 : vector<6x256xf32>
    %c0_2 = arith.constant 0 : index
    %c0_3 = arith.constant 0 : index
    %c0_4 = arith.constant 0 : index
    %10 = vector.load %arg8[%c0_2, %c0_3, %c0_4] : memref<1x10x256xf32, #tpu.memory_space<vmem>>, vector<1x6x256xf32>
    %11 = vector.shape_cast %10 : vector<1x6x256xf32> to vector<6x256xf32>
    %12 = vector.shape_cast %9 : vector<6x256xf32> to vector<1x6x256xf32>
    tpu.vector_store %arg8[%c0_2, %c0_3, %c0_4], %12 {strides = array<i32>} : memref<1x10x256xf32, #tpu.memory_space<vmem>>, vector<1x6x256xf32>,
    %c0_5 = arith.constant 0 : index
    %c0_6 = arith.constant 0 : index
    %c0_7 = arith.constant 0 : index
    %13 = vector.load %arg5[%c0_5, %c0_6, %c0_7] : memref<1x4x256xf32, #tpu.memory_space<vmem>>, vector<1x4x256xf32>
    %14 = vector.shape_cast %13 : vector<1x4x256xf32> to vector<4x256xf32>
    %15 = vector.broadcast %1 : f32 to vector<4x256xf32>
    %16 = arith.mulf %15, %14 : vector<4x256xf32>
    %c0_8 = arith.constant 0 : index
    %c0_9 = arith.constant 0 : index
    %c0_10 = arith.constant 0 : index
    %17 = vector.load %arg6[%c0_8, %c0_9, %c0_10] : memref<1x4x256xf32, #tpu.memory_space<vmem>>, vector<1x4x256xf32>
    %18 = vector.shape_cast %17 : vector<1x4x256xf32> to vector<4x256xf32>
    %19 = vector.broadcast %3 : f32 to vector<4x256xf32>
    %20 = arith.mulf %19, %18 : vector<4x256xf32>
    %21 = arith.addf %16, %20 : vector<4x256xf32>
    %c0_11 = arith.constant 0 : index
    %c6 = arith.constant 6 : index
    %c0_12 = arith.constant 0 : index
    %22 = vector.load %arg8[%c0_11, %c6, %c0_12] : memref<1x10x256xf32, #tpu.memory_space<vmem>>, vector<1x4x256xf32>
    %23 = vector.shape_cast %22 : vector<1x4x256xf32> to vector<4x256xf32>
    %24 = vector.shape_cast %21 : vector<4x256xf32> to vector<1x4x256xf32>
    tpu.vector_store %arg8[%c0_11, %c6, %c0_12], %24 {strides = array<i32>} : memref<1x10x256xf32, #tpu.memory_space<vmem>>, vector<1x4x256xf32>,
    return
  }
  func.func @transform_0(%arg0: i32, %arg1: i32, %arg2: memref<2xf32, #tpu.memory_space<smem>>, %arg3: memref<2xf32, #tpu.memory_space<smem>>, %arg4: memref<2xf32, #tpu.memory_space<smem>>) -> (i32, i32, i32) {
    %c0_i32 = arith.constant 0 : i32
    %c0_i32_0 = arith.constant 0 : i32
    return %arg0, %c0_i32, %arg1 : i32, i32, i32
  }
  func.func @transform_1(%arg0: i32, %arg1: i32, %arg2: memref<2xf32, #tpu.memory_space<smem>>, %arg3: memref<2xf32, #tpu.memory_space<smem>>, %arg4: memref<2xf32, #tpu.memory_space<smem>>) -> (i32, i32, i32) {
    %c0_i32 = arith.constant 0 : i32
    %c0_i32_0 = arith.constant 0 : i32
    return %arg0, %c0_i32, %arg1 : i32, i32, i32
  }
  func.func @transform_2(%arg0: i32, %arg1: i32, %arg2: memref<2xf32, #tpu.memory_space<smem>>, %arg3: memref<2xf32, #tpu.memory_space<smem>>, %arg4: memref<2xf32, #tpu.memory_space<smem>>) -> (i32, i32, i32) {
    %c0_i32 = arith.constant 0 : i32
    %c0_i32_0 = arith.constant 0 : i32
    return %arg0, %c0_i32, %arg1 : i32, i32, i32
  }
  func.func @transform_3(%arg0: i32, %arg1: i32, %arg2: memref<2xf32, #tpu.memory_space<smem>>, %arg3: memref<2xf32, #tpu.memory_space<smem>>, %arg4: memref<2xf32, #tpu.memory_space<smem>>) -> (i32, i32, i32) {
    %c0_i32 = arith.constant 0 : i32
    %c0_i32_0 = arith.constant 0 : i32
    return %arg0, %c0_i32, %arg1 : i32, i32, i32
  }
}

</mosaic_0001>

<bundles_post_ra>
// kernel: tpu_custom_call.1
= control target key start
LH: loop header
LB: loop body
LE: loop exit
PB: predicated region body
PF: predicated region fallthrough
CT: control target
= control target key end

     0   :  { %s643_s0 = inlined_call_operand.vmem [shape: f32[2], index: 0, kind: input, shape index: {}]   ;;  %s644_s3 = inlined_call_operand.vmem [shape: f32[2,4,256], index: 3, kind: input, shape index: {}]   ;;  %s645_s4 = inlined_call_operand.vmem [shape: f32[2,4,256], index: 4, kind: input, shape index: {}]   ;;  %s646_s5 = inlined_call_operand.vmem [shape: f32[2,6,256], index: 5, kind: input, shape index: {}]   ;;  %s647_s6 = inlined_call_operand.vmem [shape: f32[2,10,256], index: 6, kind: output, shape index: {}]   ;;  %s648_s1 = inlined_call_operand.vmem [shape: f32[2], index: 1, kind: input, shape index: {}]   ;;  %s649_s2 = inlined_call_operand.vmem [shape: f32[2], index: 2, kind: input, shape index: {}]  }
   0x1   :  { %s11_s23 = sshll.u32 %s643_s0, 4  ;;  %s15_s26 = sshll.u32 %s648_s1, 4  ;;  %s12_s23 = int_to_ptr.vmem [resolvable:$true] %s11_s23  ;;  %s16_s26 = int_to_ptr.vmem [resolvable:$true] %s15_s26 }
   0x2   :  { %s495_s27 = scalar_lea.vmem %s12_s23, 16  ;;  %p500_p1 = scmp.lt.s32.totalorder %s12_s23, %s12_s23 }
   0x3   :  { %p496_p0 = scmp.ne.s32.totalorder %s12_s23, %s495_s27  ;;  %p501_p2 = scmp.lt.s32.totalorder %s495_s27, %s495_s27 }
   0x5   :  { %p502_p3 = por %p501_p2, %p500_p1 }
   0x7   :  { %p503_p4 = pnand %p502_p3, %p496_p0 }
   0x9   :  { %506 = shalt.err (!%p503_p4)  }
   0xa   :  { %s557_s28 = smov [#allocation3]   ;;  %s507_s29 = scalar_lea.vmem %s16_s26, 16 }
   0xb   :  { %14 = dma.vmem_to_smem %s12_s23, 16, %s557_s28, [#allocation2] }
   0xc   :  { %p508_p5 = scmp.ne.s32.totalorder %s16_s26, %s507_s29  ;;  %p512_p6 = scmp.lt.s32.totalorder %s16_s26, %s16_s26 }
   0xd   :  { %p513_p7 = scmp.lt.s32.totalorder %s507_s29, %s507_s29 }
   0xf   :  { %p514_p8 = por %p513_p7, %p512_p6 }
  0x11   :  { %p515_p9 = pnand %p514_p8, %p508_p5 }
  0x13   :  { %518 = shalt.err (!%p515_p9)  }
  0x14   :  { %s558_s0 = smov [#allocation4]   ;;  %s19_s7 = sshll.u32 %s649_s2, 4  ;;  %s20_s7 = int_to_ptr.vmem [resolvable:$true] %s19_s7 }
  0x15   :  { %18 = dma.vmem_to_smem %s16_s26, 16, %s558_s0, [#allocation2] }
  0x16   :  { %s519_s8 = scalar_lea.vmem %s20_s7, 16  ;;  %p524_p11 = scmp.lt.s32.totalorder %s20_s7, %s20_s7 }
  0x17   :  { %p520_p10 = scmp.ne.s32.totalorder %s20_s7, %s519_s8  ;;  %p525_p12 = scmp.lt.s32.totalorder %s519_s8, %s519_s8 }
  0x19   :  { %p526_p13 = por %p525_p12, %p524_p11 }
  0x1b   :  { %p527_p0 = pnand %p526_p13, %p520_p10 }
  0x1d   :  { %530 = shalt.err (!%p527_p0)  }
  0x1e   :  { %s559_s9 = smov [#allocation5]  }
  0x1f   :  { %22 = dma.vmem_to_smem %s20_s7, 16, %s559_s9, [#allocation2] }
  0x20   :  { %543 = dma.done.wait [#allocation2], 48 }
  0x21   :  { %544 = vsyncadd [#allocation2], 4294967248 }
  0x22   :  { %24 = sfence }
  0x23   :  { %s604_s10 = smov 0   ;;  %s606_s11 = smov 0  }
  0x24   :  { %s608_s12 = smov 0  }
  0x25 LB: > { %s42_s2 = sadd.s32 1, %s551_s11  ;;  %p453_p1 = scmp.ge.s32.totalorder %s555_s12, 1  ;;  %s555_s12 = sphi %s608_s12, %s30_s12   ;;  %s551_s11 = sphi %s606_s11, %s651_s11   ;;  %s547_s10 = sphi %s604_s10, %s650_s10  }
  0x26   : > { %p44_p2 = scmp.ge.s32.totalorder %s42_s2, 2  ;;  %p209_p3 = scmp.lt.s32.totalorder %s555_s12, 3 }
  0x28   : > { %s653_s2 = smov (%p44_p2, %s42_s2), 0  ;;  %p210_p4 = pnand %p453_p1, %p209_p3 }
  0x29   : > { %p260_p5 = scmp.lt.s32.totalorder (!%p210_p4), %s547_s10, 1  ;;  %s301_s13 = sld [smem:[#allocation5 + %s547_s10]] (!%p210_p4) }
  0x2a   : > { %213 = sbr.rel (%p210_p4) target bundleno = 65 (0x41), region = 32  ;;  %s299_s14 = sld [smem:[#allocation3 + %s547_s10]] (!%p210_p4) }
  0x2b   : > { %s300_s15 = sld [smem:[#allocation4 + %s547_s10]] (!%p210_p4) }
  0x2f   : > { %v304_v1 = vstv (!%p210_p4), %s301_s13 }
  0x30   : > { %v310_v5 = vstv (!%p210_p4), %s299_s14 }
  0x31   : > { %s655_s10 = smov (!%p260_p5, %s547_s10), 1  ;;  %v313_v6 = vstv %s300_s15 }
  0x32   : > { %s466_s16 = sshll.u32 %s655_s10, 4  ;;  %s467_s17 = sshll.u32 %s655_s10, 5 }
  0x33   : > { %s287_s20 = scalar_lea.vmem %s646_s5, %s466_s16  ;;  %s297_s23 = scalar_lea.vmem %s647_s6, %s467_s17 }
  0x34   : > { %v302_v0 = vld [vmem:[%s287_s20] sm:$0x3f]  ;;  %v303_v2 = vld [vmem:[%s287_s20 + $0x8] sm:$0x3f]  ;;  %s464_s24 = sshll.u32 %s655_s10, 3 }
  0x35   : > { %v305_v3 = vmul.f32 %v304_v1, %v302_v0  ;;  %v306_v4 = vmul.f32 %v304_v1, %v303_v2  ;;  %s267_s27 = scalar_lea.vmem %s644_s3, %s464_s24  ;;  %s277_s0 = scalar_lea.vmem %s645_s4, %s464_s24 }
  0x36   : > { %v309_v7 = vld [vmem:[%s267_s27] sm:$0xff] }
  0x37   : > { %v312_v8 = vld [vmem:[%s277_s0] sm:$0xff]  ;;  %307 = vst [vmem:[%s297_s23] sm:$0x3f] %v305_v3  ;;  %308 = vst [vmem:[%s297_s23 + $0x8] sm:$0x3f] %v306_v4  ;;  %v311_v9 = vmul.f32 %v310_v5, %v309_v7 }
  0x38   : > { %v314_v10 = vmul.f32 %v313_v6, %v312_v8 }
  0x3a   : > { %v315_v11 = vadd.f32 %v314_v10, %v311_v9 }
  0x3c   : > { %v318_v12 = vrot.slane %v315_v11, 2  ;;  %v317_v13 = vcombine.high %v315_v11, %v315_v11 }
  0x3e   : > { %322 = vst [vmem:[%s297_s23 + $0x10] ss:$-12 sps:$4 sm:$0xc3] %v318_v12   ;;  %v319_v14 = vrot.slane %v317_v13, 2 }
  0x40   : > { %323 = vst [vmem:[%s297_s23 + $0x18] ss:$-12 sps:$4 sm:$0xc3] %v319_v14  }
  0x41 PF: > { %s30_s12 = sadd.s32 1, %s555_s12   ;;  %s650_s10 = smov %s551_s11 }
  0x42   : > { %p27_p6 = scmp.ge.s32.totalorder %s30_s12, 4   ;;  %s651_s11 = smov %s653_s2 }
  0x44   :  { %29 = sbr.rel (!%p27_p6) target bundleno = 37 (0x25), region = 68 }

</bundles_post_ra>
